<compile_context>
chip_gen: v5e
topology: v5e:2x2
jax: 0.10.0
libtpu: 0.0.40
codegen_flags: <defaults>
</compile_context>

<pallas_src>
import functools

import jax
import jax.numpy as jnp
from jax.experimental import pallas as pl
from jax.experimental.pallas import tpu as pltpu

_TARGET_BLOCK_BYTES = 8 * 1024 * 1024   # aim for ~8 MiB (tile_b, C) blocks


def _vmem_budgets():
    """(vmem_limit_bytes, tile_budget_bytes) per TPU generation."""
    try:
        cap = int(pltpu.get_tpu_info().vmem_capacity_bytes)
    except Exception:  # no info available -> assume the smallest (v7x, 64 MiB)
        cap = 64 * 1024 * 1024
    if cap >= 100 * 1024 * 1024:          # v5e / v6e: 128 MiB physical VMEM
        return 96 * 1024 * 1024, 48 * 1024 * 1024
    return 40 * 1024 * 1024, 18 * 1024 * 1024   # v7x: 64 MiB physical VMEM


def _choose_tile_b(B, C, tile_budget):
    """Rows per block: ~8 MiB blocks, bounded by the pipelined-buffer budget."""
    row_bytes = 4 * max(C, 1)
    # normalize pass is the worst case: x block + out block, each double-buffered
    cap_rows = max(8, tile_budget // (4 * row_bytes))
    target_rows = max(8, _TARGET_BLOCK_BYTES // row_bytes)
    t = min(cap_rows, target_rows)
    if B <= t:
        return B                           # one full-dim block (always legal)
    return max(8, (t // 8) * 8)


# ---------------------------------------------------------------------------
# Pass 1 (large path): per-channel sum / sum-of-squares, accumulated over tiles
# ---------------------------------------------------------------------------
def _stats_kernel(x_ref, sum_ref, sumsq_ref, *, true_b, tile_b, tps, needs_mask):
    t = pl.program_id(1)

    @pl.when(t == 0)
    def _():
        sum_ref[...] = jnp.zeros_like(sum_ref)
        sumsq_ref[...] = jnp.zeros_like(sumsq_ref)

    x = x_ref[...].astype(jnp.float32)                       # (tile_b, C)
    if needs_mask:
        p = pl.program_id(0)
        row0 = (p * tps + t) * tile_b
        rows = jax.lax.broadcasted_iota(jnp.int32, x.shape, 0) + row0
        x = jnp.where(rows < true_b, x, 0.0)                 # zero ragged tail rows

    s1 = jnp.sum(x, axis=0, keepdims=True)                   # (1, C)
    s2 = jnp.sum(x * x, axis=0, keepdims=True)               # (1, C)
    sum_ref[...] += s1[None]                                 # (1, 1, C)
    sumsq_ref[...] += s2[None]


# ---------------------------------------------------------------------------
# Pass 2 (large / eval path): fused per-channel scale/shift epilogue
# ---------------------------------------------------------------------------
def _norm_kernel(x_ref, scale_ref, shift_ref, out_ref):
    x = x_ref[...].astype(jnp.float32)
    out_ref[...] = (x * scale_ref[...] + shift_ref[...]).astype(out_ref.dtype)


# ---------------------------------------------------------------------------
# Small-tensor fast path: stats + normalize in a single call (x read once)
# ---------------------------------------------------------------------------
def _fused_kernel(x_ref, onehot_s_ref, onehot_ref, gamma_ref, beta_ref,
                  out_ref, mean_ref, var_ref, *, eps):
    x = x_ref[...].astype(jnp.float32)                       # (B, C)
    s1 = jnp.sum(x, axis=0, keepdims=True)                   # (1, C)
    s2 = jnp.sum(x * x, axis=0, keepdims=True)               # (1, C)

    oh_s = onehot_s_ref[...]                                 # (G, C), cols scaled 1/(B*count)
    mean_g = jnp.sum(oh_s * s1, axis=1, keepdims=True)       # (G, 1)
    ex2_g = jnp.sum(oh_s * s2, axis=1, keepdims=True)        # (G, 1)
    var_g = jnp.maximum(ex2_g - mean_g * mean_g, 0.0)        # biased batch var

    inv_std = jax.lax.rsqrt(var_g + eps)
    scale_g = gamma_ref[...] * inv_std                       # (G, 1)
    shift_g = beta_ref[...] - mean_g * scale_g               # (G, 1)

    oh = onehot_ref[...]                                     # (G, C) 0/1
    scale_c = jnp.sum(oh * scale_g, axis=0, keepdims=True)   # (1, C)
    shift_c = jnp.sum(oh * shift_g, axis=0, keepdims=True)   # (1, C)

    out_ref[...] = (x * scale_c + shift_c).astype(out_ref.dtype)
    mean_ref[...] = mean_g
    var_ref[...] = var_g


# ---------------------------------------------------------------------------
# pallas_call wrappers
# ---------------------------------------------------------------------------
def _run_stats(x2d, tile_b, n_split, tps, needs_mask, vmem_limit):
    B, C = x2d.shape
    kern = functools.partial(_stats_kernel, true_b=B, tile_b=tile_b, tps=tps,
                             needs_mask=needs_mask)
    return pl.pallas_call(
        kern,
        out_shape=(jax.ShapeDtypeStruct((n_split, 1, C), jnp.float32),
                   jax.ShapeDtypeStruct((n_split, 1, C), jnp.float32)),
        grid=(n_split, tps),
        in_specs=[pl.BlockSpec((tile_b, C), lambda p, t: (p * tps + t, 0))],
        out_specs=(pl.BlockSpec((1, 1, C), lambda p, t: (p, 0, 0)),
                   pl.BlockSpec((1, 1, C), lambda p, t: (p, 0, 0))),
        compiler_params=pltpu.CompilerParams(
            dimension_semantics=("parallel", "arbitrary"),
            vmem_limit_bytes=vmem_limit),
    )(x2d)


def _apply_norm(x2d, scale_c, shift_c, tile_b, nt, vmem_limit):
    B, C = x2d.shape
    return pl.pallas_call(
        _norm_kernel,
        out_shape=jax.ShapeDtypeStruct((B, C), x2d.dtype),
        grid=(nt,),
        in_specs=[pl.BlockSpec((tile_b, C), lambda i: (i, 0)),
                  pl.BlockSpec((1, C), lambda i: (0, 0)),
                  pl.BlockSpec((1, C), lambda i: (0, 0))],
        out_specs=pl.BlockSpec((tile_b, C), lambda i: (i, 0)),
        compiler_params=pltpu.CompilerParams(
            dimension_semantics=("parallel",), vmem_limit_bytes=vmem_limit),
    )(x2d, scale_c, shift_c)


def _fused_call(x2d, onehot_s, onehot, gamma_col, beta_col, eps, vmem_limit):
    B, C = x2d.shape
    G = onehot.shape[0]
    kern = functools.partial(_fused_kernel, eps=eps)
    out, mean_col, var_col = pl.pallas_call(
        kern,
        out_shape=(jax.ShapeDtypeStruct((B, C), x2d.dtype),
                   jax.ShapeDtypeStruct((G, 1), jnp.float32),
                   jax.ShapeDtypeStruct((G, 1), jnp.float32)),
        grid=(1,),
        in_specs=[pl.BlockSpec((B, C), lambda i: (0, 0)),
                  pl.BlockSpec((G, C), lambda i: (0, 0)),
                  pl.BlockSpec((G, C), lambda i: (0, 0)),
                  pl.BlockSpec((G, 1), lambda i: (0, 0)),
                  pl.BlockSpec((G, 1), lambda i: (0, 0))],
        out_specs=(pl.BlockSpec((B, C), lambda i: (0, 0)),
                   pl.BlockSpec((G, 1), lambda i: (0, 0)),
                   pl.BlockSpec((G, 1), lambda i: (0, 0))),
        compiler_params=pltpu.CompilerParams(
            dimension_semantics=("arbitrary",), vmem_limit_bytes=vmem_limit),
    )(x2d, onehot_s, onehot, gamma_col, beta_col)
    return out, mean_col[:, 0], var_col[:, 0]


def _fold_scale_shift(mean_g, var_g, eps, gamma_f, beta_f, groups):
    inv_std = jax.lax.rsqrt(var_g + eps)
    if gamma_f is not None:
        scale_g = gamma_f * inv_std
        shift_g = beta_f - mean_g * scale_g
    else:
        scale_g = inv_std
        shift_g = -mean_g * scale_g
    C = groups.shape[0]
    return scale_g[groups].reshape(1, C), shift_g[groups].reshape(1, C)


# ---------------------------------------------------------------------------
# Public forward
# ---------------------------------------------------------------------------
def group_batch_norm(x, channel_groups, *, num_groups=None, eps=1e-5, momentum=0.1,
                     affine=False, gamma=None, beta=None,
                     track_running_stats=True, running_mean=None, running_var=None,
                     training=True, tile_b=None, allow_fused=True):
    """GroupBatchNorm forward. Returns (x_out (B,C,1), new_running_mean, new_running_var)."""
    if x.ndim == 3 and x.shape[-1] == 1:
        x = x[..., 0]
    B, C = x.shape

    groups = jnp.asarray(channel_groups, dtype=jnp.int32)
    if num_groups is None:
        # Fallback only; pass num_groups statically to avoid a host sync.
        num_groups = int(jax.device_get(jnp.max(groups))) + 1
    G = int(num_groups)

    vmem_limit, tile_budget = _vmem_budgets()
    if tile_b is None:
        tile_b = _choose_tile_b(B, C, tile_budget)
    tile_b = max(1, min(int(tile_b), B))
    if tile_b != B:
        tile_b = max(8, (tile_b // 8) * 8)        # sublane-aligned blocks

    nt = pl.cdiv(B, tile_b)
    n_split = 2 if (nt >= 4 and nt % 2 == 0) else 1   # v7x: split stats over both TCs
    tps = nt // n_split
    needs_mask = (n_split * tps * tile_b != B)

    gamma_f = beta_f = None
    if affine and gamma is not None and beta is not None:
        gamma_f = jnp.asarray(gamma, jnp.float32).reshape(G)   # per-GROUP params
        beta_f = jnp.asarray(beta, jnp.float32).reshape(G)

    use_batch_stats = training or not track_running_stats

    if use_batch_stats:
        fused_bytes = (2 * B * C + 2 * G * C + 4 * C) * 4
        if allow_fused and fused_bytes <= tile_budget:
            # -------- fused single-call fast path (x read from HBM once) ------
            onehot = (jnp.arange(G, dtype=jnp.int32)[:, None] == groups[None, :]
                      ).astype(jnp.float32)                           # (G, C)
            counts = jnp.sum(onehot, axis=1, keepdims=True)           # (G, 1)
            onehot_s = onehot / jnp.maximum(counts * float(B), 1.0)
            g_col = (gamma_f if gamma_f is not None
                     else jnp.ones((G,), jnp.float32)).reshape(G, 1)
            b_col = (beta_f if beta_f is not None
                     else jnp.zeros((G,), jnp.float32)).reshape(G, 1)
            out2d, mean_g, var_g = _fused_call(x, onehot_s, onehot, g_col, b_col,
                                               float(eps), vmem_limit)
        else:
            # -------- large path: streamed stats + streamed normalize ---------
            sum_o, sumsq_o = _run_stats(x, tile_b, n_split, tps, needs_mask, vmem_limit)
            sum_c = jnp.sum(sum_o[:, 0, :], axis=0)                   # (C,)
            sumsq_c = jnp.sum(sumsq_o[:, 0, :], axis=0)               # (C,)
            counts = jnp.zeros((G,), jnp.float32).at[groups].add(1.0)
            denom = jnp.maximum(counts * float(B), 1.0)               # guard empty groups
            mean_g = jnp.zeros((G,), jnp.float32).at[groups].add(sum_c) / denom
            ex2_g = jnp.zeros((G,), jnp.float32).at[groups].add(sumsq_c) / denom
            var_g = jnp.maximum(ex2_g - mean_g * mean_g, 0.0)         # biased batch var
            scale_c, shift_c = _fold_scale_shift(mean_g, var_g, eps, gamma_f, beta_f, groups)
            out2d = _apply_norm(x, scale_c, shift_c, tile_b, nt, vmem_limit)
    else:
        # -------- eval path: normalize with running stats ---------------------
        mean_g = jnp.asarray(running_mean, jnp.float32) if running_mean is not None \
            else jnp.zeros((G,), jnp.float32)
        var_g = jnp.asarray(running_var, jnp.float32) if running_var is not None \
            else jnp.ones((G,), jnp.float32)
        scale_c, shift_c = _fold_scale_shift(mean_g, var_g, eps, gamma_f, beta_f, groups)
        out2d = _apply_norm(x, scale_c, shift_c, tile_b, nt, vmem_limit)

    x_out = out2d[..., None]                                          # (B, C, 1)

    if track_running_stats:
        rm = jnp.asarray(running_mean, jnp.float32) if running_mean is not None \
            else jnp.zeros((G,), jnp.float32)
        rv = jnp.asarray(running_var, jnp.float32) if running_var is not None \
            else jnp.ones((G,), jnp.float32)
        if use_batch_stats:
            new_rm = (1.0 - momentum) * rm + momentum * mean_g
            new_rv = (1.0 - momentum) * rv + momentum * var_g
        else:
            new_rm, new_rv = rm, rv
    else:
        new_rm, new_rv = None, None

    return x_out, new_rm, new_rv


# ---------------------------------------------------------------------------
# Pure-JAX reference (mirrors the PyTorch scatter-mean implementation)
# ---------------------------------------------------------------------------
def _reference(x, groups, eps, gamma=None, beta=None):
    if x.ndim == 3 and x.shape[-1] == 1:
        x = x[..., 0]
    x = x.astype(jnp.float32)
    B, C = x.shape
    G = int(jax.device_get(jnp.max(groups))) + 1
    gi = jnp.broadcast_to(groups[None, :], (B, C)).reshape(-1)
    xf = x.reshape(-1)
    cnt = jnp.zeros((G,)).at[gi].add(1.0)
    mean = jnp.zeros((G,)).at[gi].add(xf) / cnt
    var = jnp.zeros((G,)).at[gi].add((xf - mean[gi]) ** 2) / cnt
    normed = (xf - mean[gi]) / jnp.sqrt(var[gi] + eps)
    if gamma is not None and beta is not None:
        normed = normed * gamma[gi] + beta[gi]
    return normed.reshape(B, C)[..., None], mean, var


if __name__ == "__main__":
    key = jax.random.PRNGKey(0)
    k1, k2, k3, k4 = jax.random.split(key, 4)
    eps = 1e-5

    # ---- test 1: small shape -> fused single-call fast path -----------------
    B, C, G = 8, 32, 4
    groups = jnp.arange(C, dtype=jnp.int32) % G
    x = jax.random.normal(k1, (B, C, 1), dtype=jnp.float32)
    out, rm, rv = group_batch_norm(x, groups, num_groups=G, eps=eps, momentum=0.1)
    out = jax.block_until_ready(out)
    ref, mref, vref = _reference(x, groups, eps)
    assert out.shape == (B, C, 1)
    assert jnp.allclose(out, ref, atol=1e-4, rtol=1e-4), "fused path mismatch"
    assert jnp.allclose(rm, 0.1 * mref, atol=1e-4), "running mean mismatch"
    assert jnp.allclose(rv, 0.9 + 0.1 * vref, atol=1e-4), "running var mismatch"

    # ---- test 2: two-pass streamed path (ragged tail mask + 2-way TC split) --
    B2, C2, G2 = 250, 64, 5
    groups2 = jnp.arange(C2, dtype=jnp.int32) % G2
    x2 = jax.random.normal(k2, (B2, C2, 1), dtype=jnp.float32) * 0.7 + 0.3
    gamma2 = 1.0 + 0.1 * jax.random.normal(k3, (G2,), dtype=jnp.float32)
    beta2 = 0.1 * jax.random.normal(k4, (G2,), dtype=jnp.float32)
    out2, _, _ = group_batch_norm(x2, groups2, num_groups=G2, eps=eps,
                                  affine=True, gamma=gamma2, beta=beta2,
                                  tile_b=32, allow_fused=False)
    out2 = jax.block_until_ready(out2)
    ref2, _, _ = _reference(x2, groups2, eps, gamma=gamma2, beta=beta2)
    assert out2.shape == (B2, C2, 1)
    assert jnp.allclose(out2, ref2, atol=1e-3, rtol=1e-3), "two-pass path mismatch"

    # ---- test 3: eval path (normalize with running stats) --------------------
    out_e, rm_e, rv_e = group_batch_norm(x, groups, num_groups=G, eps=eps,
                                         training=False,
                                         running_mean=rm, running_var=rv)
    out_e = jax.block_until_ready(out_e)
    ref_e = (x[..., 0] - rm[groups]) / jnp.sqrt(rv[groups] + eps)
    assert jnp.allclose(out_e[..., 0], ref_e, atol=1e-4, rtol=1e-4), "eval path mismatch"
    assert jnp.allclose(rm_e, rm) and jnp.allclose(rv_e, rv)

    print("KERNEL_OK")
</pallas_src>

<mosaic_0001>
module attributes {stable_mosaic.version = 11 : i64} {
  func.func @_fused_kernel(%arg0: i32, %arg1: memref<8x32xf32, #tpu.memory_space<vmem>>, %arg2: memref<4x32xf32, #tpu.memory_space<vmem>>, %arg3: memref<4x32xf32, #tpu.memory_space<vmem>>, %arg4: memref<4x1xf32, #tpu.memory_space<vmem>>, %arg5: memref<4x1xf32, #tpu.memory_space<vmem>>, %arg6: memref<8x32xf32, #tpu.memory_space<vmem>>, %arg7: memref<4x1xf32, #tpu.memory_space<vmem>>, %arg8: memref<4x1xf32, #tpu.memory_space<vmem>>) attributes {dimension_semantics = [#tpu.dimension_semantics<arbitrary>], iteration_bounds = array<i64: 1>, scalar_prefetch = 0 : i64, scratch_operands = 0 : i64, tpu.core_type = #tpu.core_type<tc>, window_params = [{pipeline_mode = #tpu.pipeline_mode<synchronous>, transform_indices = @transform_0, window_bounds = array<i64: 8, 32>}, {pipeline_mode = #tpu.pipeline_mode<synchronous>, transform_indices = @transform_1, window_bounds = array<i64: 4, 32>}, {pipeline_mode = #tpu.pipeline_mode<synchronous>, transform_indices = @transform_2, window_bounds = array<i64: 4, 32>}, {pipeline_mode = #tpu.pipeline_mode<synchronous>, transform_indices = @transform_3, window_bounds = array<i64: 4, 1>}, {pipeline_mode = #tpu.pipeline_mode<synchronous>, transform_indices = @transform_4, window_bounds = array<i64: 4, 1>}, {pipeline_mode = #tpu.pipeline_mode<synchronous>, transform_indices = @transform_5, window_bounds = array<i64: 8, 32>}, {pipeline_mode = #tpu.pipeline_mode<synchronous>, transform_indices = @transform_6, window_bounds = array<i64: 4, 1>}, {pipeline_mode = #tpu.pipeline_mode<synchronous>, transform_indices = @transform_7, window_bounds = array<i64: 4, 1>}]} {
    %c0 = arith.constant 0 : index
    %c0_0 = arith.constant 0 : index
    %0 = vector.load %arg1[%c0, %c0_0] : memref<8x32xf32, #tpu.memory_space<vmem>>, vector<8x32xf32>
    %cst = arith.constant dense<0.000000e+00> : vector<32xf32>
    %1 = vector.multi_reduction <add>, %0, %cst [0] : vector<8x32xf32> to vector<32xf32>
    %2 = vector.shape_cast %1 : vector<32xf32> to vector<1x32xf32>
    %3 = arith.mulf %0, %0 : vector<8x32xf32>
    %cst_1 = arith.constant dense<0.000000e+00> : vector<32xf32>
    %4 = vector.multi_reduction <add>, %3, %cst_1 [0] : vector<8x32xf32> to vector<32xf32>
    %5 = vector.shape_cast %4 : vector<32xf32> to vector<1x32xf32>
    %c0_2 = arith.constant 0 : index
    %c0_3 = arith.constant 0 : index
    %6 = vector.load %arg2[%c0_2, %c0_3] : memref<4x32xf32, #tpu.memory_space<vmem>>, vector<4x32xf32>
    %7 = vector.broadcast %2 : vector<1x32xf32> to vector<4x32xf32>
    %8 = arith.mulf %6, %7 : vector<4x32xf32>
    %cst_4 = arith.constant dense<0.000000e+00> : vector<4xf32>
    %9 = vector.multi_reduction <add>, %8, %cst_4 [1] : vector<4x32xf32> to vector<4xf32>
    %10 = vector.shape_cast %9 : vector<4xf32> to vector<4x1xf32>
    %11 = vector.broadcast %5 : vector<1x32xf32> to vector<4x32xf32>
    %12 = arith.mulf %6, %11 : vector<4x32xf32>
    %cst_5 = arith.constant dense<0.000000e+00> : vector<4xf32>
    %13 = vector.multi_reduction <add>, %12, %cst_5 [1] : vector<4x32xf32> to vector<4xf32>
    %14 = vector.shape_cast %13 : vector<4xf32> to vector<4x1xf32>
    %15 = arith.mulf %10, %10 : vector<4x1xf32>
    %16 = arith.subf %14, %15 : vector<4x1xf32>
    %cst_6 = arith.constant 0.000000e+00 : f32
    %17 = vector.broadcast %cst_6 : f32 to vector<4x1xf32>
    %18 = arith.maximumf %16, %17 : vector<4x1xf32>
    %cst_7 = arith.constant 9.99999974E-6 : f32
    %19 = vector.broadcast %cst_7 : f32 to vector<4x1xf32>
    %20 = arith.addf %18, %19 : vector<4x1xf32>
    %21 = math.rsqrt %20 : vector<4x1xf32>
    %c0_8 = arith.constant 0 : index
    %c0_9 = arith.constant 0 : index
    %22 = vector.load %arg4[%c0_8, %c0_9] : memref<4x1xf32, #tpu.memory_space<vmem>>, vector<4x1xf32>
    %23 = arith.mulf %22, %21 : vector<4x1xf32>
    %c0_10 = arith.constant 0 : index
    %c0_11 = arith.constant 0 : index
    %24 = vector.load %arg5[%c0_10, %c0_11] : memref<4x1xf32, #tpu.memory_space<vmem>>, vector<4x1xf32>
    %25 = arith.mulf %10, %23 : vector<4x1xf32>
    %26 = arith.subf %24, %25 : vector<4x1xf32>
    %c0_12 = arith.constant 0 : index
    %c0_13 = arith.constant 0 : index
    %27 = vector.load %arg3[%c0_12, %c0_13] : memref<4x32xf32, #tpu.memory_space<vmem>>, vector<4x32xf32>
    %28 = vector.broadcast %23 : vector<4x1xf32> to vector<4x32xf32>
    %29 = arith.mulf %27, %28 : vector<4x32xf32>
    %cst_14 = arith.constant dense<0.000000e+00> : vector<32xf32>
    %30 = vector.multi_reduction <add>, %29, %cst_14 [0] : vector<4x32xf32> to vector<32xf32>
    %31 = vector.shape_cast %30 : vector<32xf32> to vector<1x32xf32>
    %32 = vector.broadcast %26 : vector<4x1xf32> to vector<4x32xf32>
    %33 = arith.mulf %27, %32 : vector<4x32xf32>
    %cst_15 = arith.constant dense<0.000000e+00> : vector<32xf32>
    %34 = vector.multi_reduction <add>, %33, %cst_15 [0] : vector<4x32xf32> to vector<32xf32>
    %35 = vector.shape_cast %34 : vector<32xf32> to vector<1x32xf32>
    %36 = vector.broadcast %31 : vector<1x32xf32> to vector<8x32xf32>
    %37 = arith.mulf %0, %36 : vector<8x32xf32>
    %38 = vector.broadcast %35 : vector<1x32xf32> to vector<8x32xf32>
    %39 = arith.addf %37, %38 : vector<8x32xf32>
    %c0_16 = arith.constant 0 : index
    %c0_17 = arith.constant 0 : index
    %40 = vector.load %arg6[%c0_16, %c0_17] : memref<8x32xf32, #tpu.memory_space<vmem>>, vector<8x32xf32>
    tpu.vector_store %arg6[%c0_16, %c0_17], %39 {strides = array<i32>} : memref<8x32xf32, #tpu.memory_space<vmem>>, vector<8x32xf32>,
    %c0_18 = arith.constant 0 : index
    %c0_19 = arith.constant 0 : index
    %41 = vector.load %arg7[%c0_18, %c0_19] : memref<4x1xf32, #tpu.memory_space<vmem>>, vector<4x1xf32>
    tpu.vector_store %arg7[%c0_18, %c0_19], %10 {strides = array<i32>} : memref<4x1xf32, #tpu.memory_space<vmem>>, vector<4x1xf32>,
    %c0_20 = arith.constant 0 : index
    %c0_21 = arith.constant 0 : index
    %42 = vector.load %arg8[%c0_20, %c0_21] : memref<4x1xf32, #tpu.memory_space<vmem>>, vector<4x1xf32>
    tpu.vector_store %arg8[%c0_20, %c0_21], %18 {strides = array<i32>} : memref<4x1xf32, #tpu.memory_space<vmem>>, vector<4x1xf32>,
    return
  }
  func.func @transform_0(%arg0: i32) -> (i32, i32) {
    %c0_i32 = arith.constant 0 : i32
    %c0_i32_0 = arith.constant 0 : i32
    %c0_i32_1 = arith.constant 0 : i32
    return %c0_i32, %c0_i32_0 : i32, i32
  }
  func.func @transform_1(%arg0: i32) -> (i32, i32) {
    %c0_i32 = arith.constant 0 : i32
    %c0_i32_0 = arith.constant 0 : i32
    %c0_i32_1 = arith.constant 0 : i32
    return %c0_i32, %c0_i32_0 : i32, i32
  }
  func.func @transform_2(%arg0: i32) -> (i32, i32) {
    %c0_i32 = arith.constant 0 : i32
    %c0_i32_0 = arith.constant 0 : i32
    %c0_i32_1 = arith.constant 0 : i32
    return %c0_i32, %c0_i32_0 : i32, i32
  }
  func.func @transform_3(%arg0: i32) -> (i32, i32) {
    %c0_i32 = arith.constant 0 : i32
    %c0_i32_0 = arith.constant 0 : i32
    %c0_i32_1 = arith.constant 0 : i32
    return %c0_i32, %c0_i32_0 : i32, i32
  }
  func.func @transform_4(%arg0: i32) -> (i32, i32) {
    %c0_i32 = arith.constant 0 : i32
    %c0_i32_0 = arith.constant 0 : i32
    %c0_i32_1 = arith.constant 0 : i32
    return %c0_i32, %c0_i32_0 : i32, i32
  }
  func.func @transform_5(%arg0: i32) -> (i32, i32) {
    %c0_i32 = arith.constant 0 : i32
    %c0_i32_0 = arith.constant 0 : i32
    %c0_i32_1 = arith.constant 0 : i32
    return %c0_i32, %c0_i32_0 : i32, i32
  }
  func.func @transform_6(%arg0: i32) -> (i32, i32) {
    %c0_i32 = arith.constant 0 : i32
    %c0_i32_0 = arith.constant 0 : i32
    %c0_i32_1 = arith.constant 0 : i32
    return %c0_i32, %c0_i32_0 : i32, i32
  }
  func.func @transform_7(%arg0: i32) -> (i32, i32) {
    %c0_i32 = arith.constant 0 : i32
    %c0_i32_0 = arith.constant 0 : i32
    %c0_i32_1 = arith.constant 0 : i32
    return %c0_i32, %c0_i32_0 : i32, i32
  }
}

</mosaic_0001>

<bundles_post_ra>
// kernel: tpu_custom_call.1
= control target key start
LH: loop header
LB: loop body
LE: loop exit
PB: predicated region body
PF: predicated region fallthrough
CT: control target
= control target key end

     0   :  { %13 = vsyncpa [#allocation3], 0  ;;  %s324_s0 = inlined_call_operand.vmem [shape: f32[8,32], index: 0, kind: input, shape index: {}]   ;;  %s325_s1 = inlined_call_operand.hbm [shape: f32[4,32], index: 1, kind: input, shape index: {}]   ;;  %s326_s2 = inlined_call_operand.hbm [shape: f32[4,32], index: 2, kind: input, shape index: {}]   ;;  %s327_s3 = inlined_call_operand.vmem [shape: f32[4,1], index: 3, kind: input, shape index: {}]   ;;  %s328_s4 = inlined_call_operand.vmem [shape: f32[4,1], index: 4, kind: input, shape index: {}]   ;;  %s329_s5 = inlined_call_operand.hbm [shape: f32[8,32], index: 5, kind: output, shape index: {0}]   ;;  %s330_s6 = inlined_call_operand.vmem [shape: f32[4,1], index: 6, kind: output, shape index: {1}]   ;;  %s331_s7 = inlined_call_operand.vmem [shape: f32[4,1], index: 7, kind: output, shape index: {2}]  }
   0x1   :  { %14 = vsyncpa [#allocation6], 0 }
   0x2   :  { %15 = vsyncpa [#allocation4], 0  ;;  %s23_s26 = sshll.u32 %s325_s1, 4  ;;  %s243_s27 = smov [#allocation2]   ;;  %s24_s26 = int_to_ptr.hbm [resolvable:$true] %s23_s26 }
   0x3   :  { %s25_s28 = sshll.u32 %s243_s27, 4  ;;  %s34_s8 = sshll.u32 %s326_s2, 4  ;;  %s26_s28 = int_to_ptr.vmem [resolvable:$true] %s25_s28  ;;  %s35_s8 = int_to_ptr.hbm [resolvable:$true] %s34_s8 }
   0x4   :  { %28 = dma.hbm_to_vmem [thread:$0]  %s24_s26, 64, %s26_s28, [#allocation3]  }
   0x5   :  { %s244_s9 = smov [#allocation5]  }
   0x6   :  { %s36_s10 = sshll.u32 %s244_s9, 4  ;;  %s37_s10 = int_to_ptr.vmem [resolvable:$true] %s36_s10 }
   0x7   :  { %39 = dma.hbm_to_vmem [thread:$0]  %s35_s8, 64, %s37_s10, [#allocation6]  }
   0x8   :  { %237 = dma.done.wait [#allocation3], 64  }
   0x9   :  { %238 = vsyncadd [#allocation3], 4294967232 }
   0xa   :  { %239 = dma.done.wait [#allocation6], 64  }
   0xb   :  { %240 = vsyncadd [#allocation6], 4294967232  ;;  %vm53_vm0 = vcmask 261120   ;;  %v296_v0 = vld [vmem:[%s324_s0] sm:$0xff]  ;;  %vm71_vm1 = vcmask 257024   ;;  %v245_v21 = vmov 0  }
   0xc   :  { %v54_v1 = vsel %vm53_vm0, %v296_v0, 0.0  ;;  %v61_v2 = vmul.f32 %v296_v0, %v296_v0  ;;  %v69_v13 = vld [vmem:[#allocation2] sm:$0xf]  ;;  %161 = vset.pattern.permute.xlu1 %v245_v21  ;;  %162 = vset.pattern.permute.xlu0 %v245_v21  ;;  %vm128_vm2 = vcmask 3072   ;;  %v98_v40 = vld [vmem:[#allocation5] sm:$0xf] }
   0xd   :  { %v55_v3 = vrot.slane %v54_v1, 4  ;;  %v93_v34 = vld [vmem:[%s327_s3] sm:$0xf]  ;;  %s246_s3 = smov [#allocation7]   ;;  %s138_s18 = sshll.u32 %s329_s5, 4  ;;  %s139_s18 = int_to_ptr.hbm [resolvable:$true] %s138_s18 }
   0xe   :  { %v62_v4 = vsel %vm53_vm0, %v61_v2, 0.0  ;;  %v95_v38 = vld [vmem:[%s328_s4] sm:$0xf]  ;;  %s136_s4 = sshll.u32 %s246_s3, 4  ;;  %s137_s4 = int_to_ptr.vmem [resolvable:$true] %s136_s4 }
   0xf   :  { %v56_v5 = vadd.f32 %v55_v3, %v54_v1  ;;  %v63_v6 = vrot.slane %v62_v4, 4 }
  0x11   :  { %v57_v7 = vrot.slane %v56_v5, 2  ;;  %v64_v8 = vadd.f32 %v63_v6, %v62_v4 }
  0x13   :  { %v58_v9 = vadd.f32 %v57_v7, %v56_v5  ;;  %v65_v10 = vrot.slane %v64_v8, 2 }
  0x15   :  { %v59_v11 = vrot.slane %v58_v9, 1  ;;  %v66_v12 = vadd.f32 %v65_v10, %v64_v8 }
  0x17   :  { %v60_v14 = vadd.f32 %v59_v11, %v58_v9  ;;  %v67_v15 = vrot.slane %v66_v12, 1 }
  0x19   :  { %v70_v16 = vmul.f32 %v69_v13, %v60_v14  ;;  %v68_v17 = vadd.f32 %v67_v15, %v66_v12 }
  0x1b   :  { %v72_v18 = vsel %vm71_vm1, %v70_v16, 0.0  ;;  %v75_v19 = vmul.f32 %v69_v13, %v68_v17 }
  0x1c   :  { %73 = vadd.xlane.f32.xlu0 %v72_v18 }
  0x1d   :  { %v76_v20 = vsel %vm71_vm1, %v75_v19, 0.0 }
  0x24   :  { %77 = vadd.xlane.f32.xlu0 %v76_v20 }
  0x8f   :  { %v74_v22 = vpop.xlane.xlu0 %73 }
  0x90   :  { %129 = vst.msk [vmem:[%s330_s6] sm:$0xf] %vm128_vm2, %v74_v22  ;;  %v79_v23 = vmul.f32 %v74_v22, %v74_v22 }
  0x97   :  { %v78_v24 = vpop.xlane.xlu0 %77 }
  0x98   :  { %v80_v25 = vsub.f32 %v78_v24, %v79_v23 }
  0x9a   :  { %v81_v26 = vmax.f32 %v80_v25, 0.0 }
  0x9c   :  { %v82_v27 = vadd.f32 1e-05, %v81_v26  ;;  %130 = vst.msk [vmem:[%s331_s7] sm:$0xf] %vm128_vm2, %v81_v26 }
  0x9e   :  { %163 = vrsqrt.f32 %v82_v27  ;;  %vm89_vm4 = vweird.f32 %v82_v27 }
  0xa4   :  { %v164_v28 = vpop.eup %163 }
  0xa5   :  { %v84_v29 = vmul.f32 %v164_v28, %v82_v27  ;;  %vm90_vm3 = vweird.f32 %v164_v28 }
  0xa6   :  { %vm91_vm5 = vmor %vm89_vm4, %vm90_vm3 }
  0xa7   :  { %v85_v30 = vmul.f32 %v164_v28, %v84_v29 }
  0xa9   :  { %v86_v31 = vmul.f32 0.5, %v85_v30 }
  0xab   :  { %v87_v32 = vsub.f32 1.5, %v86_v31 }
  0xad   :  { %v88_v33 = vmul.f32 %v164_v28, %v87_v32 }
  0xaf   :  { %v92_v35 = vsel %vm91_vm5, %v164_v28, %v88_v33 }
  0xb0   :  { %v94_v36 = vmul.f32 %v93_v34, %v92_v35 }
  0xb2   :  { %101 = vperm.xlu1 %161, %v94_v36   ;;  %v96_v37 = vmul.f32 %v94_v36, %v74_v22 }
  0xb4   :  { %v97_v39 = vsub.f32 %v95_v38, %v96_v37 }
  0xba   :  { %114 = vperm.xlu1 %161, %v97_v39  }
 0x124   :  { %v102_v41 = vpop.permute.xlu1 %101 }
 0x125   :  { %v104_v42 = vmul.f32 %v102_v41, %v98_v40 }
 0x127   :  { %v105_v43 = vsel %vm71_vm1, %v104_v42, 0.0 }
 0x128   :  { %v106_v44 = vrot.slane %v105_v43, 4 }
 0x12a   :  { %v107_v45 = vadd.f32 %v106_v44, %v105_v43 }
 0x12c   :  { %v108_v46 = vrot.slane %v107_v45, 2  ;;  %v115_v47 = vpop.permute.xlu1 %114 }
 0x12d   :  { %v117_v48 = vmul.f32 %v115_v47, %v98_v40 }
 0x12e   :  { %v109_v49 = vadd.f32 %v108_v46, %v107_v45 }
 0x12f   :  { %v118_v50 = vsel %vm71_vm1, %v117_v48, 0.0 }
 0x130   :  { %v119_v51 = vrot.slane %v118_v50, 4  ;;  %v110_v52 = vrot.slane %v109_v49, 1 }
 0x132   :  { %v120_v53 = vadd.f32 %v119_v51, %v118_v50  ;;  %v111_v55 = vadd.f32 %v110_v52, %v109_v49 }
 0x134   :  { %v121_v54 = vrot.slane %v120_v53, 2  ;;  %v125_v58 = vmul.f32 %v111_v55, %v296_v0 }
 0x136   :  { %v122_v56 = vadd.f32 %v121_v54, %v120_v53 }
 0x138   :  { %v123_v57 = vrot.slane %v122_v56, 1 }
 0x13a   :  { %v124_v59 = vadd.f32 %v123_v57, %v122_v56 }
 0x13c   :  { %v126_v60 = vadd.f32 %v125_v58, %v124_v59 }
 0x13e   :  { %127 = vst.msk [vmem:[#allocation7] sm:$0xff] %vm53_vm0, %v126_v60 }
 0x13f   :  { %141 = dma.vmem_to_hbm [thread:$0]  %s137_s4, 128, %s139_s18, [#allocation4]  }
 0x140   :  { %241 = dma.done.wait [#allocation4], 128  }
 0x141   :  { %242 = vsyncadd [#allocation4], 4294967168 }
 0x142   :  { %154 = vsyncpa [#allocation3], 1 }
 0x143   :  { %155 = vsyncpa [#allocation6], 1 }
 0x144   :  { %156 = vsyncpa [#allocation4], 1 }

</bundles_post_ra>
